<compile_context>
chip_gen: v7x
topology: tpu7x:2x2x1
jax: 0.10.0
libtpu: 0.0.40
codegen_flags: <defaults>
</compile_context>

<pallas_src>
import functools

import jax
import jax.numpy as jnp
from jax.experimental import pallas as pl
from jax.experimental.pallas import tpu as pltpu

EPS = 0.2
IGNORE_INDEX = -1


def _round_up(x, m):
    return (x + m - 1) // m * m


def _vmem_capacity_bytes():
    try:
        return max(int(pltpu.get_tpu_info().vmem_capacity_bytes), 64 << 20)
    except Exception:
        return 64 << 20  # conservative (v7x-sized) fallback


def _instance_loss_kernel(x_ref, t_ref, w_ref, out_ref, *, n_tokens):
    i = pl.program_id(0)
    tn = x_ref.shape[0]

    x = x_ref[...].astype(jnp.float32)          # (tn, C) upcast in-kernel
    t = t_ref[...]                              # (tn, 1) int32
    w = w_ref[...]                              # (tn, 1) f32, pre-normalized

    # Ragged-tail mask: rows past the real token count contribute nothing
    # (their data is unspecified; jnp.where is a select, so it cannot leak).
    row = jax.lax.broadcasted_iota(jnp.int32, (tn, 1), 0) + i * tn
    valid = jnp.logical_and(row < n_tokens, t != IGNORE_INDEX)

    # ---- per-token NLL = lse - z[target] without materializing log-probs ----
    row_max = jnp.max(x, axis=-1, keepdims=True)                      # (tn, 1)
    z = x - row_max                                                   # (tn, C)
    lse = jnp.log(jnp.sum(jnp.exp(z), axis=-1, keepdims=True))        # (tn, 1)
    col = jax.lax.broadcasted_iota(jnp.int32, z.shape, 1)             # (tn, C)
    z_t = jnp.sum(jnp.where(col == t, z, 0.0), axis=-1, keepdims=True)
    nll = lse - z_t                                                   # (tn, 1)

    contrib = jnp.where(valid, w * nll, 0.0)                          # (tn, 1)
    out_ref[...] = jnp.sum(contrib, axis=0, keepdims=True).reshape(1, 1, 1)


def instance_loss(inputs, target, weights, *, tn=None):
    """inputs: (N, C) logits, target: (N,) int, weights: (N,) -> scalar f32."""
    N, C = inputs.shape
    itemsize = jnp.dtype(inputs.dtype).itemsize
    cap = _vmem_capacity_bytes()

    # --- token-tile size: largest that keeps double-buffered tiles in VMEM ---
    row_bytes = C * itemsize + 8         # logits row + int32 target + f32 weight
    if tn is None:
        tn = (4 << 20) // max(1, C * itemsize)        # ~4 MiB logits tile
    tn_cap = max(8, int(0.4 * cap) // (2 * row_bytes))
    tn = min(int(tn), tn_cap, 4096, _round_up(N, 8))
    tn = max(8, (tn // 8) * 8)
    num_tiles = pl.cdiv(N, tn)

    # --- hoisted token-axis softmax (it never touches the logits) ---
    t_flat = target.reshape(-1).astype(jnp.int32)
    w_flat = weights.reshape(-1).astype(jnp.float32)
    mask = jnp.where(t_flat == 0, jnp.float32(EPS), jnp.float32(1.0))
    w_norm = jax.nn.softmax(mask + w_flat, axis=-1)   # (N,), exact (no padding)
    t2 = t_flat.reshape(N, 1)
    w2 = w_norm.reshape(N, 1)

    # --- VMEM limit: double-buffered tiles + slack, clamped per generation ---
    need = 2 * tn * row_bytes + (1 << 20)
    vmem_limit = int(min(max(2 * need, 32 << 20), int(0.9 * cap)))

    partials = pl.pallas_call(
        functools.partial(_instance_loss_kernel, n_tokens=N),
        out_shape=jax.ShapeDtypeStruct((num_tiles, 1, 1), jnp.float32),
        grid_spec=pltpu.PrefetchScalarGridSpec(
            num_scalar_prefetch=0,
            grid=(num_tiles,),
            in_specs=[
                pl.BlockSpec((tn, C), lambda i: (i, 0)),   # full-extent class axis
                pl.BlockSpec((tn, 1), lambda i: (i, 0)),
                pl.BlockSpec((tn, 1), lambda i: (i, 0)),
            ],
            out_specs=pl.BlockSpec((1, 1, 1), lambda i: (i, 0, 0)),
        ),
        compiler_params=pltpu.CompilerParams(
            dimension_semantics=("parallel",),   # independent tiles -> both TCs on v7x
            vmem_limit_bytes=vmem_limit,
        ),
    )(inputs, t2, w2)

    # Tiny combine of per-tile partials (order differs from a serial sum; fine
    # at 1e-5 in f32).
    return jnp.sum(partials)


def _reference(inputs, target, weights):
    # Pure-JAX reference mirroring the PyTorch module.
    logp = jax.nn.log_softmax(inputs.astype(jnp.float32), axis=-1)
    safe_t = jnp.clip(target, 0, inputs.shape[-1] - 1)
    nll = -jnp.take_along_axis(logp, safe_t[:, None], axis=-1)[:, 0]
    loss = jnp.where(target != IGNORE_INDEX, nll, 0.0)
    mask = jnp.where(target == 0, EPS, 1.0)
    w = jax.nn.softmax(mask + weights, axis=-1)
    return jnp.dot(w, loss)


if __name__ == "__main__":
    batch, seq_len, C = 2, 8, 32
    N = batch * seq_len

    key = jax.random.PRNGKey(0)
    k1, k2, k3 = jax.random.split(key, 3)
    inputs = jax.random.normal(k1, (N, C), dtype=jnp.float32)
    # labels in [-1, C): includes ignore_index (-1) and class 0
    target = jax.random.randint(k2, (N,), -1, C, dtype=jnp.int32)
    weights = jax.random.uniform(k3, (N,), dtype=jnp.float32)

    # tn=8 -> 2 grid steps at this toy size (multi-tile path).
    out = jax.block_until_ready(instance_loss(inputs, target, weights, tn=8))
    ref = jax.block_until_ready(_reference(inputs, target, weights))
    assert jnp.allclose(out, ref, atol=1e-5, rtol=1e-5), (out, ref)

    # Ragged token count (N not a multiple of tn) exercises the in-kernel row
    # mask that replaced the wrapper-side padding.
    N2 = 13
    inputs2 = jax.random.normal(k1, (N2, C), dtype=jnp.float32)
    target2 = jax.random.randint(k2, (N2,), -1, C, dtype=jnp.int32)
    weights2 = jax.random.uniform(k3, (N2,), dtype=jnp.float32)
    out2 = jax.block_until_ready(instance_loss(inputs2, target2, weights2, tn=8))
    ref2 = jax.block_until_ready(_reference(inputs2, target2, weights2))
    assert jnp.allclose(out2, ref2, atol=1e-5, rtol=1e-5), (out2, ref2)

    print("KERNEL_OK")
</pallas_src>

<mosaic_0001>
module attributes {stable_mosaic.version = 11 : i64} {
  func.func @_instance_loss_kernel(%arg0: i32, %arg1: memref<8x32xf32, #tpu.memory_space<vmem>>, %arg2: memref<8x1xi32, #tpu.memory_space<vmem>>, %arg3: memref<8x1xf32, #tpu.memory_space<vmem>>, %arg4: memref<1x1x1xf32, #tpu.memory_space<vmem>>) attributes {dimension_semantics = [#tpu.dimension_semantics<parallel>], iteration_bounds = array<i64: 2>, scalar_prefetch = 0 : i64, scratch_operands = 0 : i64, tpu.core_type = #tpu.core_type<tc>, window_params = [{transform_indices = @transform_0, window_bounds = array<i64: 8, 32>}, {transform_indices = @transform_1, window_bounds = array<i64: 8, 1>}, {transform_indices = @transform_2, window_bounds = array<i64: 8, 1>}, {transform_indices = @transform_3, window_bounds = array<i64: 1, 1, 1>}]} {
    %c0 = arith.constant 0 : index
    %c0_0 = arith.constant 0 : index
    %0 = vector.load %arg1[%c0, %c0_0] : memref<8x32xf32, #tpu.memory_space<vmem>>, vector<8x32xf32>
    %c0_1 = arith.constant 0 : index
    %c0_2 = arith.constant 0 : index
    %1 = vector.load %arg2[%c0_1, %c0_2] : memref<8x1xi32, #tpu.memory_space<vmem>>, vector<8x1xi32>
    %c0_3 = arith.constant 0 : index
    %c0_4 = arith.constant 0 : index
    %2 = vector.load %arg3[%c0_3, %c0_4] : memref<8x1xf32, #tpu.memory_space<vmem>>, vector<8x1xf32>
    %3 = tpu.iota {dimensions = array<i32: 0>} : vector<8x1xi32>
    %c8_i32 = arith.constant 8 : i32
    %4 = arith.muli %arg0, %c8_i32 : i32
    %5 = vector.broadcast %4 : i32 to vector<8x1xi32>
    %6 = arith.addi %3, %5 : vector<8x1xi32>
    %c16_i32 = arith.constant 16 : i32
    %7 = vector.broadcast %c16_i32 : i32 to vector<8x1xi32>
    %8 = arith.cmpi slt, %6, %7 : vector<8x1xi32>
    %c-1_i32 = arith.constant -1 : i32
    %9 = vector.broadcast %c-1_i32 : i32 to vector<8x1xi32>
    %10 = arith.cmpi ne, %1, %9 : vector<8x1xi32>
    %11 = arith.andi %8, %10 : vector<8x1xi1>
    %cst = arith.constant dense<0xFF800000> : vector<8xf32>
    %12 = vector.multi_reduction <maximumf>, %0, %cst [1] : vector<8x32xf32> to vector<8xf32>
    %13 = vector.shape_cast %12 : vector<8xf32> to vector<8x1xf32>
    %14 = vector.broadcast %13 : vector<8x1xf32> to vector<8x32xf32>
    %15 = arith.subf %0, %14 : vector<8x32xf32>
    %16 = math.exp %15 : vector<8x32xf32>
    %cst_5 = arith.constant dense<0.000000e+00> : vector<8xf32>
    %17 = vector.multi_reduction <add>, %16, %cst_5 [1] : vector<8x32xf32> to vector<8xf32>
    %18 = vector.shape_cast %17 : vector<8xf32> to vector<8x1xf32>
    %19 = math.log %18 : vector<8x1xf32>
    %20 = tpu.iota {dimensions = array<i32: 1>} : vector<8x32xi32>
    %21 = vector.broadcast %1 : vector<8x1xi32> to vector<8x32xi32>
    %22 = arith.cmpi eq, %20, %21 : vector<8x32xi32>
    %cst_6 = arith.constant 0.000000e+00 : f32
    %23 = vector.broadcast %cst_6 : f32 to vector<8x32xf32>
    %24 = arith.select %22, %15, %23 : vector<8x32xi1>, vector<8x32xf32>
    %cst_7 = arith.constant dense<0.000000e+00> : vector<8xf32>
    %25 = vector.multi_reduction <add>, %24, %cst_7 [1] : vector<8x32xf32> to vector<8xf32>
    %26 = vector.shape_cast %25 : vector<8xf32> to vector<8x1xf32>
    %27 = arith.subf %19, %26 : vector<8x1xf32>
    %28 = arith.mulf %2, %27 : vector<8x1xf32>
    %cst_8 = arith.constant 0.000000e+00 : f32
    %29 = vector.broadcast %cst_8 : f32 to vector<8x1xf32>
    %30 = arith.select %11, %28, %29 : vector<8x1xi1>, vector<8x1xf32>
    %cst_9 = arith.constant dense<0.000000e+00> : vector<1xf32>
    %31 = vector.multi_reduction <add>, %30, %cst_9 [0] : vector<8x1xf32> to vector<1xf32>
    %32 = vector.shape_cast %31 : vector<1xf32> to vector<1x1xf32>
    %33 = vector.shape_cast %32 : vector<1x1xf32> to vector<1x1x1xf32>
    %c0_10 = arith.constant 0 : index
    %c0_11 = arith.constant 0 : index
    %c0_12 = arith.constant 0 : index
    %34 = vector.load %arg4[%c0_10, %c0_11, %c0_12] : memref<1x1x1xf32, #tpu.memory_space<vmem>>, vector<1x1x1xf32>
    tpu.vector_store %arg4[%c0_10, %c0_11, %c0_12], %33 {strides = array<i32>} : memref<1x1x1xf32, #tpu.memory_space<vmem>>, vector<1x1x1xf32>,
    return
  }
  func.func @transform_0(%arg0: i32) -> (i32, i32) {
    %c0_i32 = arith.constant 0 : i32
    %c0_i32_0 = arith.constant 0 : i32
    return %arg0, %c0_i32 : i32, i32
  }
  func.func @transform_1(%arg0: i32) -> (i32, i32) {
    %c0_i32 = arith.constant 0 : i32
    %c0_i32_0 = arith.constant 0 : i32
    return %arg0, %c0_i32 : i32, i32
  }
  func.func @transform_2(%arg0: i32) -> (i32, i32) {
    %c0_i32 = arith.constant 0 : i32
    %c0_i32_0 = arith.constant 0 : i32
    return %arg0, %c0_i32 : i32, i32
  }
  func.func @transform_3(%arg0: i32) -> (i32, i32, i32) {
    %c0_i32 = arith.constant 0 : i32
    %c0_i32_0 = arith.constant 0 : i32
    %c0_i32_1 = arith.constant 0 : i32
    return %arg0, %c0_i32, %c0_i32_0 : i32, i32, i32
  }
}

</mosaic_0001>

<bundles_post_ra>
// kernel: tpu_custom_call.1
= control target key start
LH: loop header
LB: loop body
LE: loop exit
PB: predicated region body
PF: predicated region fallthrough
CT: control target
= control target key end

     0   :  { %s369_s12 = smov 0   ;;  %s410_s0 = inlined_call_operand.vmem [shape: f32[16,32], index: 0, kind: input, shape index: {}]   ;;  %s411_s1 = inlined_call_operand.vmem [shape: s32[16,1], index: 1, kind: input, shape index: {}]   ;;  %s412_s2 = inlined_call_operand.vmem [shape: f32[16,1], index: 2, kind: input, shape index: {}]   ;;  %s413_s3 = inlined_call_operand.vmem [shape: f32[2,1,1], index: 3, kind: output, shape index: {}]  }
   0x1 LB: > { %s315_s13 = sadd.s32 4294967295, %s346_s12   ;;  %p319_p0 = scmp.ge.s32.totalorder %s346_s12, 1  ;;  %s346_s12 = sphi %s369_s12, %s13_s12  }
   0x2   : > { %p154_p1 = scmp.lt.s32.totalorder %s346_s12, 3 }
   0x4   : > { %p155_p2 = pnand %p319_p0, %p154_p1 }
   0x5   : > { %p183_p3 = scmp.lt.s32.totalorder (!%p155_p2), %s315_s13, 1  ;;  %v201_v0 = vlaneseq (!%p155_p2)  ;;  %s323_s14 = sshll.u32 (!%p155_p2), %s315_s13, 3  ;;  %v348_v1 = vmov (!%p155_p2), 0   ;;  %vm209_vm0 = vcmask (!%p155_p2), 261120   ;;  %vm234_vm5 = vcmask (!%p155_p2), 7168  }
   0x6   : > { %158 = sbr.rel (%p155_p2) target bundleno = 350 (0x15e), region = 32  ;;  %335 = vset.pattern.permute.xlu0 (!%p155_p2), %v348_v1  ;;  %v204_v2 = vstv (!%p155_p2), %s323_s14  ;;  %vm242_vm6 = vcmask (!%p155_p2), 0  }
   0x7   : > { %v202_v3 = vshrl.u32 (!%p155_p2), %v201_v0, 7  ;;  %v222_v12 = vand.u32 (!%p155_p2), 127, %v201_v0 }
   0x9   : > { %v205_v4 = vadd.s32 (!%p155_p2), %v204_v2, %v202_v3 }
   0xb   : > { %vm206_vm1 = vcmp.lt.s32.totalorder (!%p155_p2), %v205_v4, 16 }
   0xd   : > { %s417_s13 = smov (!%p183_p3, %s315_s13), 1 }
   0xe   : > { %s380_s15 = sshll.u32 %s417_s13, 3  ;;  %s197_s27 = scalar_lea.vmem %s413_s3, %s417_s13 }
   0xf   : > { %s186_s18 = scalar_lea.vmem %s410_s0, %s380_s15  ;;  %s190_s21 = scalar_lea.vmem %s411_s1, %s380_s15 }
  0x10   : > { %v198_v5 = vld [vmem:[%s186_s18] sm:$0xff]  ;;  %s194_s24 = scalar_lea.vmem %s412_s2, %s380_s15 }
  0x11   : > { %v199_v6 = vld [vmem:[%s190_s21] sm:$0xff]  ;;  %v210_v7 = vsel %vm209_vm0, %v198_v5, -inf }
  0x12   : > { %vm207_vm2 = vcmp.ne.s32.totalorder %v199_v6, 4294967295  ;;  %211 = vmax.xlane.f32.xlu0 %v210_v7  ;;  %v200_v21 = vld [vmem:[%s194_s24] sm:$0xff] }
  0x13   : > { %vm391_vm3 = vmand %vm206_vm1, %vm207_vm2 }
  0x28   : > { %224 = vperm.xlu0 %335, %v199_v6  }
  0x9f   : > { %v212_v9 = vpop.xlane.xlu0 %211 }
  0xa0   : > { %v213_v10 = vsub.f32 %v198_v5, %v212_v9 }
  0xa2   : > { %v214_v11 = vmul.f32 1.442695, %v213_v10 }
  0xa4   : > { %336 = vpow2.f32 %v214_v11 }
  0xa7   : > { %v225_v13 = vpop.permute.xlu0 %224 }
  0xa8   : > { %vm226_vm4 = vcmp.eq.s32.totalorder %v222_v12, %v225_v13 }
  0xa9   : > { %v227_v16 = vsel %vm226_vm4, %v213_v10, 0.0 }
  0xaa   : > { %v228_v17 = vsel %vm209_vm0, %v227_v16, 0.0 }
  0xae   : > { %v337_v14 = vpop.eup %336 }
  0xaf   : > { %v216_v15 = vsel %vm209_vm0, %v337_v14, 0.0 }
  0xb0   : > { %217 = vadd.xlane.f32.xlu1 %v216_v15 }
  0xb4   : > { %229 = vadd.xlane.f32.xlu1 %v228_v17 }
 0x13d   : > { %v218_v18 = vpop.xlane.xlu1 %217 }
 0x13e   : > { %338 = vlog2.f32 %v218_v18 }
 0x141   : > { %v230_v22 = vpop.xlane.xlu1 %229 }
 0x148   : > { %v339_v19 = vpop.eup %338 }
 0x149   : > { %v220_v20 = vmul.f32 0.6931472, %v339_v19 }
 0x14b   : > { %v231_v23 = vsub.f32 %v220_v20, %v230_v22 }
 0x14d   : > { %v232_v24 = vmul.f32 %v231_v23, %v200_v21 }
 0x14f   : > { %v233_v25 = vsel %vm391_vm3, %v232_v24, 0.0 }
 0x150   : > { %v235_v26 = vsel %vm234_vm5, %v233_v25, 0.0 }
 0x151   : > { %v236_v27 = vrot.slane %v235_v26, 4 }
 0x153   : > { %v237_v28 = vadd.f32 %v236_v27, %v235_v26 }
 0x155   : > { %v238_v29 = vrot.slane %v237_v28, 2 }
 0x157   : > { %v239_v30 = vadd.f32 %v238_v29, %v237_v28 }
 0x159   : > { %v240_v31 = vrot.slane %v239_v30, 1 }
 0x15b   : > { %v241_v32 = vadd.f32 %v240_v31, %v239_v30 }
 0x15d   : > { %243 = vst.msk [vmem:[%s197_s27] sm:$0x1] %vm242_vm6, %v241_v32 }
 0x15e PF: > { %s13_s12 = sadd.s32 1, %s346_s12  }
 0x15f   : > { %p10_p4 = scmp.ge.s32.totalorder %s13_s12, 4  }
 0x161   :  { %12 = sbr.rel (!%p10_p4) target bundleno = 1 (0x1), region = 68 }

</bundles_post_ra>
